<compile_context>
chip_gen: v5e
topology: v5e:2x2
jax: 0.10.0
libtpu: 0.0.40
codegen_flags: <defaults>
</compile_context>

<pallas_src>
import functools

import jax
import jax.numpy as jnp
from jax import lax
from jax.experimental import pallas as pl
from jax.experimental.pallas import tpu as pltpu


def _tv_partial_kernel(x_ref, mask_ref, out_ref, *, w, hw, n_planes, tb,
                       need_row_mask, aligned_h):
    """Partial TV sums for one block of `tb` flattened (H*W) planes.

    x_ref    : (tb, hw) VMEM tile, hw = H*W (lane-dense)
    mask_ref : (2, hw)  VMEM; row 0 = h-validity, row 1 = w-validity (0/1 f32).
               Constant index_map -> fetched once, resident across the grid.
    out_ref  : (1, 2)   SMEM block -> [h_tv_partial, w_tv_partial]
    """
    x = x_ref[...]
    masks = mask_ref[...]
    w_mask = masks[1:2, :]                                   # (1, hw)

    # Width neighbor: roll(shift = hw - 1) gives result[i] = x[(i + 1) % hw];
    # wrap-around entries (last column of each image row) are killed by w_mask.
    d_w = (pltpu.roll(x, shift=hw - 1, axis=1) - x).astype(jnp.float32)
    sq_w = d_w * d_w * w_mask

    if aligned_h:
        # W is a multiple of 128: the +W neighbor is a lane-aligned re-read of
        # the same tile (pure vld) -> no XLU roll and no h-mask needed.
        lo = x_ref[:, pl.ds(0, hw - w)]
        hi = x_ref[:, pl.ds(w, hw - w)]
        d_h = (hi - lo).astype(jnp.float32)
        sq_h = d_h * d_h
    else:
        h_mask = masks[0:1, :]                               # (1, hw)
        d_h = (pltpu.roll(x, shift=hw - w, axis=1) - x).astype(jnp.float32)
        sq_h = d_h * d_h * h_mask

    if need_row_mask:
        # Last grid block may extend past B*C planes: zero the padded rows.
        row = lax.broadcasted_iota(jnp.int32, (tb, 1), 0)
        plane_ok = ((pl.program_id(0) * tb + row) < n_planes).astype(jnp.float32)
        sq_w = sq_w * plane_ok
        sq_h = sq_h * plane_ok

    out_ref[0, 0] = jnp.sum(sq_h)
    out_ref[0, 1] = jnp.sum(sq_w)


# Budget for the *live* VMEM per grid step: double-buffered input plus the
# f32 intermediates the body materializes (keeps us well inside the 32 MiB
# scoped limit on all of v5e/v6e/v7x).
_VMEM_LIVE_BUDGET_BYTES = 16 * 1024 * 1024


def _choose_tb(n_planes, hw, itemsize):
    # Live bytes per plane per step: 2 pipelined input buffers + ~3 f32-sized
    # temporaries (rolled copy, d_h/d_w and their squares).
    live_per_plane = hw * (2 * itemsize + 3 * 4)
    tb = max(1, _VMEM_LIVE_BUDGET_BYTES // live_per_plane)
    # Give both v7x TensorCores work when there is enough of it (>= 2 steps).
    if n_planes >= 16:
        tb = min(tb, pl.cdiv(n_planes, 2))
    if tb >= n_planes:
        return n_planes                       # full dim: always a legal block
    if tb >= 8:
        return (tb // 8) * 8                  # keep second-minor block dim 8-aligned
    # Budget wants < 8 planes/step while n_planes > tb: a (tb, hw) block would
    # violate the (8,128) rule, so take 8 planes and accept a larger footprint.
    # TODO(synk): tile the hw (lane) axis instead for extremely large planes.
    return min(8, n_planes)


def tv_loss(x, tvloss_weight=1.0):
    """Pallas implementation of TVLoss.forward for NCHW input x."""
    B, C, H, W = x.shape
    n_planes = B * C
    hw = H * W
    xr = x.reshape(n_planes, hw)              # lane-dense view: H*W maps to lanes
    itemsize = xr.dtype.itemsize

    tb = _choose_tb(n_planes, hw, itemsize)
    num_blocks = pl.cdiv(n_planes, tb)
    need_row_mask = (n_planes % tb) != 0
    aligned_h = (W % 128 == 0) and (H > 1)

    # 0/1 validity masks, built once in the wrapper and kept resident in VMEM.
    col = jnp.arange(hw, dtype=jnp.int32)
    h_valid = (col < (hw - W)).astype(jnp.float32)        # last image row: no +W neighbor
    w_valid = ((col % W) != (W - 1)).astype(jnp.float32)  # last column: no +1 neighbor
    masks = jnp.stack([h_valid, w_valid], axis=0)         # (2, hw)

    kernel = functools.partial(
        _tv_partial_kernel, w=W, hw=hw, n_planes=n_planes, tb=tb,
        need_row_mask=need_row_mask, aligned_h=aligned_h)

    # VMEM accounting: 2 input buffers + ~4 f32 temporaries + masks + slack.
    est_vmem = 2 * tb * hw * itemsize + 4 * tb * hw * 4 + 2 * hw * 4 + (1 << 20)
    vmem_limit = int(max(32 * 1024 * 1024, min(est_vmem, 128 * 1024 * 1024)))

    cost = pl.CostEstimate(
        flops=6 * n_planes * hw,
        transcendentals=0,
        bytes_accessed=n_planes * hw * itemsize + 2 * hw * 4 + num_blocks * 2 * 4)

    partials = pl.pallas_call(
        kernel,
        out_shape=jax.ShapeDtypeStruct((num_blocks, 2), jnp.float32),
        grid=(num_blocks,),
        in_specs=[pl.BlockSpec((tb, hw), lambda i: (i, 0)),
                  pl.BlockSpec((2, hw), lambda i: (0, 0))],
        out_specs=pl.BlockSpec((1, 2), lambda i: (i, 0),
                               memory_space=pltpu.MemorySpace.SMEM),
        compiler_params=pltpu.CompilerParams(
            dimension_semantics=("parallel",),   # independent per-block partials
            vmem_limit_bytes=vmem_limit),
        cost_estimate=cost,
    )(xr, masks)

    h_tv = jnp.sum(partials[:, 0])
    w_tv = jnp.sum(partials[:, 1])

    # Matches PyTorch: count_h = _tensor_size(x[:, :, 1:, :]), etc.
    # (Division by zero for H == 1 or W == 1 mirrors the original module.)
    count_h = C * (H - 1) * W
    count_w = C * H * (W - 1)
    return tvloss_weight * 2.0 * (h_tv / count_h + w_tv / count_w) / B


def tv_loss_ref(x, tvloss_weight=1.0):
    B, C, H, W = x.shape
    count_h = C * (H - 1) * W
    count_w = C * H * (W - 1)
    h_tv = jnp.sum((x[:, :, 1:, :] - x[:, :, : H - 1, :]) ** 2)
    w_tv = jnp.sum((x[:, :, :, 1:] - x[:, :, :, : W - 1]) ** 2)
    return tvloss_weight * 2.0 * (h_tv / count_h + w_tv / count_w) / B


if __name__ == "__main__":
    key = jax.random.PRNGKey(0)
    x = jax.random.normal(key, (2, 4, 16, 16), dtype=jnp.float32)

    out = jax.block_until_ready(tv_loss(x, tvloss_weight=1.0))
    ref = jax.block_until_ready(tv_loss_ref(x, tvloss_weight=1.0))

    assert jnp.allclose(out, ref, rtol=1e-5, atol=1e-5), (out, ref)
    print("KERNEL_OK")
</pallas_src>

<mosaic_0001>
module attributes {stable_mosaic.version = 11 : i64} {
  func.func @_tv_partial_kernel(%arg0: i32, %arg1: memref<8x256xf32, #tpu.memory_space<vmem>>, %arg2: memref<2x256xf32, #tpu.memory_space<vmem>>, %arg3: memref<1x2xf32, #tpu.memory_space<smem>>) attributes {dimension_semantics = [#tpu.dimension_semantics<parallel>], iteration_bounds = array<i64: 1>, scalar_prefetch = 0 : i64, scratch_operands = 0 : i64, tpu.core_type = #tpu.core_type<tc>, window_params = [{transform_indices = @transform_0, window_bounds = array<i64: 8, 256>}, {pipeline_mode = #tpu.pipeline_mode<synchronous>, transform_indices = @transform_1, window_bounds = array<i64: 2, 256>}, {transform_indices = @transform_2, window_bounds = array<i64: 1, 2>}]} {
    %c0 = arith.constant 0 : index
    %c0_0 = arith.constant 0 : index
    %0 = vector.load %arg1[%c0, %c0_0] : memref<8x256xf32, #tpu.memory_space<vmem>>, vector<8x256xf32>
    %c0_1 = arith.constant 0 : index
    %c0_2 = arith.constant 0 : index
    %1 = vector.load %arg2[%c0_1, %c0_2] : memref<2x256xf32, #tpu.memory_space<vmem>>, vector<2x256xf32>
    %2 = vector.extract_strided_slice %1 {offsets = [1, 0], sizes = [1, 256], strides = [1, 1]} : vector<2x256xf32> to vector<1x256xf32>
    %c255_i32 = arith.constant 255 : i32
    %3 = tpu.dynamic_rotate %0 by %c255_i32 dim 1 : vector<8x256xf32>, i32 -> vector<8x256xf32>
    %4 = arith.subf %3, %0 : vector<8x256xf32>
    %5 = arith.mulf %4, %4 : vector<8x256xf32>
    %6 = vector.broadcast %2 : vector<1x256xf32> to vector<8x256xf32>
    %7 = arith.mulf %5, %6 : vector<8x256xf32>
    %8 = vector.extract_strided_slice %1 {offsets = [0, 0], sizes = [1, 256], strides = [1, 1]} : vector<2x256xf32> to vector<1x256xf32>
    %c240_i32 = arith.constant 240 : i32
    %9 = tpu.dynamic_rotate %0 by %c240_i32 dim 1 : vector<8x256xf32>, i32 -> vector<8x256xf32>
    %10 = arith.subf %9, %0 : vector<8x256xf32>
    %11 = arith.mulf %10, %10 : vector<8x256xf32>
    %12 = vector.broadcast %8 : vector<1x256xf32> to vector<8x256xf32>
    %13 = arith.mulf %11, %12 : vector<8x256xf32>
    %14 = vector.shape_cast %13 : vector<8x256xf32> to vector<1x8x256xf32>
    %cst = arith.constant dense<0.000000e+00> : vector<1xf32>
    %15 = vector.multi_reduction <add>, %14, %cst [1, 2] : vector<1x8x256xf32> to vector<1xf32>
    %16 = vector.shape_cast %15 : vector<1xf32> to vector<1x1x1xf32>
    %17 = vector.extract %16[0, 0, 0] : f32 from vector<1x1x1xf32>
    %c0_3 = arith.constant 0 : index
    %c0_4 = arith.constant 0 : index
    %18 = memref.load %arg3[%c0_3, %c0_4] : memref<1x2xf32, #tpu.memory_space<smem>>
    memref.store %17, %arg3[%c0_3, %c0_4] : memref<1x2xf32, #tpu.memory_space<smem>>
    %19 = vector.shape_cast %7 : vector<8x256xf32> to vector<1x8x256xf32>
    %cst_5 = arith.constant dense<0.000000e+00> : vector<1xf32>
    %20 = vector.multi_reduction <add>, %19, %cst_5 [1, 2] : vector<1x8x256xf32> to vector<1xf32>
    %21 = vector.shape_cast %20 : vector<1xf32> to vector<1x1x1xf32>
    %22 = vector.extract %21[0, 0, 0] : f32 from vector<1x1x1xf32>
    %c0_6 = arith.constant 0 : index
    %c1 = arith.constant 1 : index
    %23 = memref.load %arg3[%c0_6, %c1] : memref<1x2xf32, #tpu.memory_space<smem>>
    memref.store %22, %arg3[%c0_6, %c1] : memref<1x2xf32, #tpu.memory_space<smem>>
    return
  }
  func.func @transform_0(%arg0: i32) -> (i32, i32) {
    %c0_i32 = arith.constant 0 : i32
    %c0_i32_0 = arith.constant 0 : i32
    return %arg0, %c0_i32 : i32, i32
  }
  func.func @transform_1(%arg0: i32) -> (i32, i32) {
    %c0_i32 = arith.constant 0 : i32
    %c0_i32_0 = arith.constant 0 : i32
    %c0_i32_1 = arith.constant 0 : i32
    return %c0_i32, %c0_i32_0 : i32, i32
  }
  func.func @transform_2(%arg0: i32) -> (i32, i32) {
    %c0_i32 = arith.constant 0 : i32
    %c0_i32_0 = arith.constant 0 : i32
    return %arg0, %c0_i32 : i32, i32
  }
}

</mosaic_0001>

<bundles_post_ra>
// kernel: tpu_custom_call.1
= control target key start
LH: loop header
LB: loop body
LE: loop exit
PB: predicated region body
PF: predicated region fallthrough
CT: control target
= control target key end

     0   :  { %7 = vsyncpa [#allocation3], 0  ;;  %s229_s0 = inlined_call_operand.hbm [shape: f32[8,256], index: 0, kind: input, shape index: {}]   ;;  %s230_s1 = inlined_call_operand.hbm [shape: f32[2,256], index: 1, kind: input, shape index: {}]   ;;  %s231_s2 = inlined_call_operand.hbm [shape: f32[1,2], index: 2, kind: output, shape index: {}]  }
   0x1   :  { %8 = vsyncpa [#allocation6], 0 }
   0x2   :  { %9 = vsyncpa [#allocation4], 0  ;;  %s15_s11 = sshll.u32 %s229_s0, 4  ;;  %s200_s12 = smov [#allocation2]   ;;  %s16_s11 = int_to_ptr.hbm [resolvable:$true] %s15_s11 }
   0x3   :  { %s17_s13 = sshll.u32 %s200_s12, 4  ;;  %s26_s16 = sshll.u32 %s230_s1, 4  ;;  %s18_s13 = int_to_ptr.vmem [resolvable:$true] %s17_s13  ;;  %s27_s16 = int_to_ptr.hbm [resolvable:$true] %s26_s16 }
   0x4   :  { %20 = dma.hbm_to_vmem [thread:$0]  %s16_s11, 256, %s18_s13, [#allocation3]  }
   0x5   :  { %s201_s17 = smov [#allocation5]  }
   0x6   :  { %s28_s18 = sshll.u32 %s201_s17, 4  ;;  %s29_s18 = int_to_ptr.vmem [resolvable:$true] %s28_s18 }
   0x7   :  { %31 = dma.hbm_to_vmem [thread:$0]  %s27_s16, 64, %s29_s18, [#allocation6]  }
   0x8   :  { %194 = dma.done.wait [#allocation3], 256  }
   0x9   :  { %195 = vsyncadd [#allocation3], 4294967040 }
   0xa   :  { %196 = dma.done.wait [#allocation6], 64  }
   0xb   :  { %197 = vsyncadd [#allocation6], 4294967232  ;;  %v40_v0 = vld [vmem:[#allocation2] sm:$0xff]  ;;  %s202_s0 = smov 112   ;;  %s203_s19 = smov 127   ;;  %v41_v1 = vld [vmem:[#allocation2 + $0x8] sm:$0xff]  ;;  %v47_v2 = vlaneseq }
   0xc   :  { %65 = vrot.lane.b32.xlu1 %v40_v0, %s202_s0  ;;  %43 = vrot.lane.b32.xlu0 %v40_v0, %s203_s19  ;;  %v42_v6 = vld [vmem:[#allocation5] sm:$0xf]  ;;  %s113_s22 = sshll.u32 %s231_s2, 4  ;;  %s204_s24 = smov [#allocation7]   ;;  %s114_s22 = int_to_ptr.hbm [resolvable:$true] %s113_s22 }
   0xd   :  { %v48_v5 = vand.u32 127, %v47_v2  ;;  %v76_v7 = vperm.slane %v42_v6, 0  ;;  %v77_v8 = vperm.slane %v42_v6, 2  ;;  %v57_v19 = vperm.slane %v42_v6, 1 }
   0xe   :  { %v58_v20 = vperm.slane %v42_v6, 3 }
   0xf   :  { %vm69_vm0 = vcmp.lt.s32.totalorder %v48_v5, 112  ;;  %vm49_vm1 = vcmp.lt.s32.totalorder %v48_v5, 127  ;;  %v80_v17 = vperm.slane %v76_v7, 0  ;;  %v81_v18 = vperm.slane %v77_v8, 0 }
  0x10   :  { %v61_v27 = vperm.slane %v57_v19, 1  ;;  %v62_v31 = vperm.slane %v58_v20, 1 }
  0x14   :  { %67 = vrot.lane.b32.xlu1 %v41_v1, %s202_s0  ;;  %45 = vrot.lane.b32.xlu0 %v41_v1, %s203_s19 }
  0x7e   :  { %v66_v3 = vpop.permute.xlu1 %65  ;;  %v44_v4 = vpop.permute.xlu0 %43 }
  0x86   :  { %v68_v9 = vpop.permute.xlu1 %67  ;;  %v46_v10 = vpop.permute.xlu0 %45 }
  0x87   :  { %v70_v11 = vsel %vm69_vm0, %v66_v3, %v68_v9  ;;  %v71_v12 = vsel %vm69_vm0, %v68_v9, %v66_v3  ;;  %v50_v13 = vsel %vm49_vm1, %v44_v4, %v46_v10  ;;  %v51_v14 = vsel %vm49_vm1, %v46_v10, %v44_v4 }
  0x88   :  { %v72_v15 = vsub.f32 %v70_v11, %v40_v0  ;;  %v73_v16 = vsub.f32 %v71_v12, %v41_v1  ;;  %v52_v23 = vsub.f32 %v50_v13, %v40_v0  ;;  %v53_v24 = vsub.f32 %v51_v14, %v41_v1 }
  0x8a   :  { %v74_v21 = vmul.f32 %v72_v15, %v72_v15  ;;  %v75_v22 = vmul.f32 %v73_v16, %v73_v16  ;;  %v54_v28 = vmul.f32 %v52_v23, %v52_v23  ;;  %v55_v29 = vmul.f32 %v53_v24, %v53_v24 }
  0x8c   :  { %v82_v25 = vmul.f32 %v80_v17, %v74_v21  ;;  %v83_v26 = vmul.f32 %v81_v18, %v75_v22  ;;  %v63_v32 = vmul.f32 %v61_v27, %v54_v28  ;;  %v64_v33 = vmul.f32 %v62_v31, %v55_v29 }
  0x8e   :  { %v84_v30 = vadd.f32 %v83_v26, %v82_v25  ;;  %v96_v34 = vadd.f32 %v64_v33, %v63_v32 }
  0x90   :  { %85 = vadd.xlane.f32.xlu2 %v84_v30 }
  0x98   :  { %97 = vadd.xlane.f32.xlu2 %v96_v34 }
 0x103   :  { %v86_v35 = vpop.xlane.xlu2 %85 }
 0x104   :  { %v87_v36 = vrot.slane %v86_v35, 4 }
 0x106   :  { %v88_v37 = vadd.f32 %v87_v36, %v86_v35 }
 0x108   :  { %v89_v38 = vrot.slane %v88_v37, 2 }
 0x10a   :  { %v90_v39 = vadd.f32 %v89_v38, %v88_v37 }
 0x10b   :  { %v98_v40 = vpop.xlane.xlu2 %97 }
 0x10c   :  { %v99_v41 = vrot.slane %v98_v40, 4  ;;  %v91_v42 = vrot.slane %v90_v39, 1 }
 0x10e   :  { %v100_v43 = vadd.f32 %v99_v41, %v98_v40  ;;  %v92_v44 = vadd.f32 %v91_v42, %v90_v39 }
 0x110   :  { %v101_v45 = vrot.slane %v100_v43, 2  ;;  %125 = vpush %v92_v44 }
 0x112   :  { %v102_v46 = vadd.f32 %v101_v45, %v100_v43 }
 0x114   :  { %v103_v47 = vrot.slane %v102_v46, 1 }
 0x116   :  { %v104_v48 = vadd.f32 %v103_v47, %v102_v46 }
 0x118   :  { %127 = vpush %v104_v48 }
 0x141   :  { %s126_s1 = spop %125 }
 0x142   :  { %95 = sst [smem:[#allocation7]] %s126_s1 }
 0x149   :  { %s128_s23 = spop %127 }
 0x14a   :  { %107 = sst [smem:[#allocation7 + $0x1]] %s128_s23 }
 0x14b   :  { %116 = dma.smem_to_hbm %s204_s24, 16, %s114_s22, [#allocation4]  }
 0x14c   :  { %198 = dma.done.wait [#allocation4], 16  }
 0x14d   :  { %199 = vsyncadd [#allocation4], 4294967280 }
 0x14e   :  { %121 = sfence }
 0x14f   :  { %122 = vsyncpa [#allocation3], 1 }
 0x150   :  { %123 = vsyncpa [#allocation6], 1 }
 0x151   :  { %124 = vsyncpa [#allocation4], 1 }

</bundles_post_ra>
